<compile_context>
chip_gen: v6e
topology: v6e:2x2x1
jax: 0.10.0
libtpu: 0.0.40
codegen_flags: <defaults>
</compile_context>

<pallas_src>
import math

import jax
import jax.numpy as jnp
from jax.experimental import pallas as pl
from jax.experimental.pallas import tpu as pltpu

# Finite stand-in for -inf used by masked_fill_: identical softmax result when
# at least one position is unmasked, but avoids (-inf) - (-inf) = NaN hazards.
# NOTE: a Python float, NOT a jnp array — jnp arrays created at module scope
# become captured constants that pallas_call rejects.
_NEG_INF = -1e30

_LANE = 128     # lane width (last dim alignment)
_SUBLANE = 8    # sublane width (second-to-last dim alignment)


def _round_up(n, m):
    return ((n + m - 1) // m) * m


def _coattention_kernel(x1_ref, x2_ref, m1_ref, m2_ref, w_ref, b_ref, out_ref):
    f32, bf16 = jnp.float32, jnp.bfloat16

    x1 = x1_ref[...]                       # (Bb, L1, Hp) f32
    x2 = x2_ref[...]                       # (Bb, L2, Hp) f32
    m1 = m1_ref[...]                       # (Bb, 1, L1)  1.0 = pad
    m2 = m2_ref[...]                       # (Bb, 1, L2)  1.0 = pad
    wc = w_ref[...].astype(bf16)           # (Hp, 2Hp) = [W_q2c | W_coatt], (in, out) layout
    bc = b_ref[...]                        # (1, 2Hp) f32 = [b_q2c | b_coatt]

    Bb, L1, Hp = x1.shape
    L2 = x2.shape[1]

    x1_bf = x1.astype(bf16)
    x2_bf = x2.astype(bf16)

    # ---- fused projections: relu(x @ [W1|W2] + [b1|b2]) — 2 MXU matmuls -----
    def project(x_flat_bf):
        p = jnp.dot(x_flat_bf, wc, preferred_element_type=f32) + bc
        return jnp.maximum(p, 0.0).astype(bf16)

    p1 = project(x1_bf.reshape(Bb * L1, Hp))             # (Bb*L1, 2Hp)
    p2 = project(x2_bf.reshape(Bb * L2, Hp))             # (Bb*L2, 2Hp)
    x1p = p1[:, :Hp].reshape(Bb, L1, Hp)                  # relu(W1 x1)
    x1q = p1[:, Hp:].reshape(Bb, L1, Hp)                  # relu(W2 x1)
    x2p = p2[:, :Hp].reshape(Bb, L2, Hp)                  # relu(W1 x2)
    x2q = p2[:, Hp:].reshape(Bb, L2, Hp)                  # relu(W2 x2)

    # ---- query2context: SeqAttnMatch(x=x2, y=x1, y_mask=x1_mask, z=x1) ------
    s1 = jnp.einsum('bik,bjk->bij', x2p, x1p, preferred_element_type=f32)     # (Bb,L2,L1)
    s1 = jnp.where(m1 > 0.0, _NEG_INF, s1)
    e1 = jnp.exp(s1 - jnp.max(s1, axis=-1, keepdims=True))
    inv1 = pl.reciprocal(jnp.sum(e1, axis=-1, keepdims=True), approx=True)    # (Bb,L2,1)
    q2c = jnp.einsum('bij,bjd->bid', e1.astype(bf16), x1_bf,
                     preferred_element_type=f32) * inv1                        # (Bb,L2,Hp)

    # ---- coattention: SeqAttnMatch(x=x1, y=x2, y_mask=x2_mask, z=[x2,q2c]) --
    s2 = jnp.einsum('bik,bjk->bij', x1q, x2q, preferred_element_type=f32)     # (Bb,L1,L2)
    s2 = jnp.where(m2 > 0.0, _NEG_INF, s2)
    e2 = jnp.exp(s2 - jnp.max(s2, axis=-1, keepdims=True))
    inv2 = pl.reciprocal(jnp.sum(e2, axis=-1, keepdims=True), approx=True)    # (Bb,L1,1)
    e2_bf = e2.astype(bf16)

    # alpha @ concat(x2, q2c) == [alpha @ x2, alpha @ q2c]
    co_x2 = jnp.einsum('bij,bjd->bid', e2_bf, x2_bf, preferred_element_type=f32)
    co_q2c = jnp.einsum('bij,bjd->bid', e2_bf, q2c.astype(bf16),
                        preferred_element_type=f32)

    # new_x1 = concat(x1, coatt): three lane-aligned slab stores, no concat temp.
    out_ref[:, :, 0:Hp] = x1.astype(out_ref.dtype)
    out_ref[:, :, Hp:2 * Hp] = (co_x2 * inv2).astype(out_ref.dtype)
    out_ref[:, :, 2 * Hp:3 * Hp] = (co_q2c * inv2).astype(out_ref.dtype)


def coattention_forward(x1, x2, x1_mask, x2_mask, params, *, reverse=False, block_b=8):
    """Coattention.forward.

    x1:      (B, L1, H) float32
    x2:      (B, L2, H) float32
    x1_mask: (B, L1)    int/bool, 1 = pad
    x2_mask: (B, L2)    int/bool, 1 = pad
    params:  (w1, b1, w2, b2) with w: (H, H) stored (in, out), b: (1, H)
    returns  (B, L1, 3H) float32
    """
    if reverse:
        x1, x1_mask, x2, x2_mask = x2, x2_mask, x1, x1_mask
    w1, b1, w2, b2 = params
    B, L1, H = x1.shape
    _, L2, _ = x2.shape

    # Lane / sublane aligned padded sizes (padded positions are masked out,
    # padded feature columns are zero, and everything is sliced away below).
    Hp = _round_up(H, _LANE)
    L1p = _round_up(L1, _SUBLANE)
    L2p = _round_up(L2, _SUBLANE)
    Bb = min(block_b, B)
    Bp = _round_up(B, Bb)

    x1_p = jnp.pad(x1, ((0, Bp - B), (0, L1p - L1), (0, Hp - H)))
    x2_p = jnp.pad(x2, ((0, Bp - B), (0, L2p - L2), (0, Hp - H)))
    m1 = jnp.pad(x1_mask.astype(jnp.float32), ((0, Bp - B), (0, L1p - L1)),
                 constant_values=1.0).reshape(Bp, 1, L1p)
    m2 = jnp.pad(x2_mask.astype(jnp.float32), ((0, Bp - B), (0, L2p - L2)),
                 constant_values=1.0).reshape(Bp, 1, L2p)

    pad_w = lambda w: jnp.pad(w, ((0, Hp - H), (0, Hp - H)))
    pad_b = lambda b: jnp.pad(b, ((0, 0), (0, Hp - H)))
    w_cat = jnp.concatenate([pad_w(w1), pad_w(w2)], axis=1)       # (Hp, 2Hp)
    b_cat = jnp.concatenate([pad_b(b1), pad_b(b2)], axis=1)       # (1, 2Hp)

    out = pl.pallas_call(
        _coattention_kernel,
        out_shape=jax.ShapeDtypeStruct((Bp, L1p, 3 * Hp), jnp.float32),
        grid_spec=pltpu.PrefetchScalarGridSpec(
            num_scalar_prefetch=0,
            grid=(Bp // Bb,),
            in_specs=[
                pl.BlockSpec((Bb, L1p, Hp), lambda b: (b, 0, 0)),    # x1 block
                pl.BlockSpec((Bb, L2p, Hp), lambda b: (b, 0, 0)),    # x2 block
                pl.BlockSpec((Bb, 1, L1p), lambda b: (b, 0, 0)),     # x1_mask
                pl.BlockSpec((Bb, 1, L2p), lambda b: (b, 0, 0)),     # x2_mask
                pl.BlockSpec((Hp, 2 * Hp), lambda b: (0, 0)),        # [W1|W2] (resident)
                pl.BlockSpec((1, 2 * Hp), lambda b: (0, 0)),         # [b1|b2] (resident)
            ],
            out_specs=pl.BlockSpec((Bb, L1p, 3 * Hp), lambda b: (b, 0, 0)),
        ),
        compiler_params=pltpu.CompilerParams(
            dimension_semantics=("parallel",),        # batch blocks across TCs (v7x)
            vmem_limit_bytes=64 * 1024 * 1024,        # raise scoped VMEM above default
        ),
    )(x1_p, x2_p, m1, m2, w_cat, b_cat)

    # Strip padding (no-op when shapes are already aligned, e.g. DrQA H=256).
    if (Bp, L1p, Hp) == (B, L1, H):
        return out
    out = out[:B, :L1]
    if Hp == H:
        return out
    return jnp.concatenate(
        [out[..., 0:H], out[..., Hp:Hp + H], out[..., 2 * Hp:2 * Hp + H]], axis=-1)


def init_coattention_params(key, hidden_size):
    """nn.Linear-shaped params, uniform(-1/sqrt(H), 1/sqrt(H)).

    Weights are stored (in_features, out_features) so the kernel computes
    x @ W + b (equivalent to PyTorch's x @ W.T + b with W = (out, in))."""
    stdv = 1.0 / math.sqrt(hidden_size)
    k1, k2, k3, k4 = jax.random.split(key, 4)
    w1 = jax.random.uniform(k1, (hidden_size, hidden_size), jnp.float32, -stdv, stdv)
    b1 = jax.random.uniform(k2, (1, hidden_size), jnp.float32, -stdv, stdv)
    w2 = jax.random.uniform(k3, (hidden_size, hidden_size), jnp.float32, -stdv, stdv)
    b2 = jax.random.uniform(k4, (1, hidden_size), jnp.float32, -stdv, stdv)
    return w1, b1, w2, b2


# ---------------------- pure-JAX references (for checking) ----------------------
def _seq_attn_match_ref(x, y, y_mask, w, b, z=None, *, matmul_dtype=jnp.float32):
    if z is None:
        z = y
    md = matmul_dtype

    def lin(v):
        return jnp.einsum('bik,kj->bij', v.astype(md), w.astype(md),
                          preferred_element_type=jnp.float32) + b

    xp = jax.nn.relu(lin(x))
    yp = jax.nn.relu(lin(y))
    scores = jnp.einsum('bik,bjk->bij', xp.astype(md), yp.astype(md),
                        preferred_element_type=jnp.float32)
    scores = jnp.where(y_mask[:, None, :] > 0, _NEG_INF, scores)
    alpha = jax.nn.softmax(scores, axis=-1)
    return jnp.einsum('bij,bjd->bid', alpha.astype(md), z.astype(md),
                      preferred_element_type=jnp.float32)


def coattention_ref(x1, x2, x1_mask, x2_mask, params, *, matmul_dtype=jnp.float32):
    w1, b1, w2, b2 = params
    q2c = _seq_attn_match_ref(x2, x1, x1_mask, w1, b1, matmul_dtype=matmul_dtype)
    z = jnp.concatenate([x2, q2c], axis=-1)
    coatt = _seq_attn_match_ref(x1, x2, x2_mask, w2, b2, z=z, matmul_dtype=matmul_dtype)
    return jnp.concatenate([x1, coatt], axis=-1)


if __name__ == "__main__":
    batch, len1, len2, hidden = 2, 8, 16, 32

    key = jax.random.PRNGKey(0)
    kx1, kx2, kp = jax.random.split(key, 3)
    x1 = jax.random.normal(kx1, (batch, len1, hidden), jnp.float32)
    x2 = jax.random.normal(kx2, (batch, len2, hidden), jnp.float32)

    # 1 = padded position; second batch element has real padding to exercise the mask path.
    x1_mask = jnp.zeros((batch, len1), jnp.int32).at[1, len1 - 2:].set(1)
    x2_mask = jnp.zeros((batch, len2), jnp.int32).at[1, len2 - 4:].set(1)

    params = init_coattention_params(kp, hidden)

    out = jax.block_until_ready(coattention_forward(x1, x2, x1_mask, x2_mask, params))

    assert out.shape == (batch, len1, 3 * hidden), out.shape
    assert bool(jnp.all(jnp.isfinite(out)))

    # Precision-matched reference (bf16 matmul operands, f32 accumulate) — tight check
    # that catches indexing/layout bugs; residual gap is softmax/recip rounding only.
    ref_bf16 = coattention_ref(x1, x2, x1_mask, x2_mask, params, matmul_dtype=jnp.bfloat16)
    assert bool(jnp.allclose(out, ref_bf16, atol=1e-2, rtol=1e-2)), \
        float(jnp.max(jnp.abs(out - ref_bf16)))

    # Full-f32 reference — looser bound; the difference is purely the bf16-MXU /
    # approximate-reciprocal precision of the kernel's fast path.
    ref_f32 = coattention_ref(x1, x2, x1_mask, x2_mask, params)
    assert bool(jnp.allclose(out, ref_f32, atol=5e-2, rtol=5e-2)), \
        float(jnp.max(jnp.abs(out - ref_f32)))

    print("KERNEL_OK")
</pallas_src>

<mosaic_0001>
module attributes {stable_mosaic.version = 11 : i64} {
  func.func @_coattention_kernel(%arg0: i32, %arg1: memref<2x8x128xf32, #tpu.memory_space<vmem>>, %arg2: memref<2x16x128xf32, #tpu.memory_space<vmem>>, %arg3: memref<2x1x8xf32, #tpu.memory_space<vmem>>, %arg4: memref<2x1x16xf32, #tpu.memory_space<vmem>>, %arg5: memref<128x256xf32, #tpu.memory_space<vmem>>, %arg6: memref<1x256xf32, #tpu.memory_space<vmem>>, %arg7: memref<2x8x384xf32, #tpu.memory_space<vmem>>) attributes {dimension_semantics = [#tpu.dimension_semantics<parallel>], iteration_bounds = array<i64: 1>, scalar_prefetch = 0 : i64, scratch_operands = 0 : i64, tpu.core_type = #tpu.core_type<tc>, window_params = [{transform_indices = @transform_0, window_bounds = array<i64: 2, 8, 128>}, {transform_indices = @transform_1, window_bounds = array<i64: 2, 16, 128>}, {transform_indices = @transform_2, window_bounds = array<i64: 2, 1, 8>}, {transform_indices = @transform_3, window_bounds = array<i64: 2, 1, 16>}, {pipeline_mode = #tpu.pipeline_mode<synchronous>, transform_indices = @transform_4, window_bounds = array<i64: 128, 256>}, {pipeline_mode = #tpu.pipeline_mode<synchronous>, transform_indices = @transform_5, window_bounds = array<i64: 1, 256>}, {transform_indices = @transform_6, window_bounds = array<i64: 2, 8, 384>}]} {
    %c0 = arith.constant 0 : index
    %c0_0 = arith.constant 0 : index
    %c0_1 = arith.constant 0 : index
    %0 = vector.load %arg1[%c0, %c0_0, %c0_1] : memref<2x8x128xf32, #tpu.memory_space<vmem>>, vector<2x8x128xf32>
    %c0_2 = arith.constant 0 : index
    %c0_3 = arith.constant 0 : index
    %c0_4 = arith.constant 0 : index
    %1 = vector.load %arg2[%c0_2, %c0_3, %c0_4] : memref<2x16x128xf32, #tpu.memory_space<vmem>>, vector<2x16x128xf32>
    %c0_5 = arith.constant 0 : index
    %c0_6 = arith.constant 0 : index
    %c0_7 = arith.constant 0 : index
    %2 = vector.load %arg3[%c0_5, %c0_6, %c0_7] : memref<2x1x8xf32, #tpu.memory_space<vmem>>, vector<2x1x8xf32>
    %c0_8 = arith.constant 0 : index
    %c0_9 = arith.constant 0 : index
    %c0_10 = arith.constant 0 : index
    %3 = vector.load %arg4[%c0_8, %c0_9, %c0_10] : memref<2x1x16xf32, #tpu.memory_space<vmem>>, vector<2x1x16xf32>
    %c0_11 = arith.constant 0 : index
    %c0_12 = arith.constant 0 : index
    %4 = vector.load %arg5[%c0_11, %c0_12] : memref<128x256xf32, #tpu.memory_space<vmem>>, vector<128x256xf32>
    %5 = arith.truncf %4 : vector<128x256xf32> to vector<128x256xbf16>
    %c0_13 = arith.constant 0 : index
    %c0_14 = arith.constant 0 : index
    %6 = vector.load %arg6[%c0_13, %c0_14] : memref<1x256xf32, #tpu.memory_space<vmem>>, vector<1x256xf32>
    %7 = arith.truncf %0 : vector<2x8x128xf32> to vector<2x8x128xbf16>
    %8 = arith.truncf %1 : vector<2x16x128xf32> to vector<2x16x128xbf16>
    %9 = vector.shape_cast %7 : vector<2x8x128xbf16> to vector<16x128xbf16>
    %cst = arith.constant dense<0.000000e+00> : vector<16x256xf32>
    %10 = tpu.matmul %9, %5, %cst {dimension_numbers = #tpu.dot_dimension_numbers<[1], [0], [0], [1], [0, 0, 1, 1], [], []>} : vector<16x128xbf16>, vector<128x256xbf16>, vector<16x256xf32> -> vector<16x256xf32>
    %11 = vector.broadcast %6 : vector<1x256xf32> to vector<16x256xf32>
    %12 = arith.addf %10, %11 : vector<16x256xf32>
    %cst_15 = arith.constant 0.000000e+00 : f32
    %13 = vector.broadcast %cst_15 : f32 to vector<16x256xf32>
    %14 = arith.maximumf %12, %13 : vector<16x256xf32>
    %15 = arith.truncf %14 : vector<16x256xf32> to vector<16x256xbf16>
    %16 = vector.shape_cast %8 : vector<2x16x128xbf16> to vector<32x128xbf16>
    %cst_16 = arith.constant dense<0.000000e+00> : vector<32x256xf32>
    %17 = tpu.matmul %16, %5, %cst_16 {dimension_numbers = #tpu.dot_dimension_numbers<[1], [0], [0], [1], [0, 0, 1, 1], [], []>} : vector<32x128xbf16>, vector<128x256xbf16>, vector<32x256xf32> -> vector<32x256xf32>
    %18 = vector.broadcast %6 : vector<1x256xf32> to vector<32x256xf32>
    %19 = arith.addf %17, %18 : vector<32x256xf32>
    %cst_17 = arith.constant 0.000000e+00 : f32
    %20 = vector.broadcast %cst_17 : f32 to vector<32x256xf32>
    %21 = arith.maximumf %19, %20 : vector<32x256xf32>
    %22 = arith.truncf %21 : vector<32x256xf32> to vector<32x256xbf16>
    %23 = vector.extract_strided_slice %15 {offsets = [0, 0], sizes = [16, 128], strides = [1, 1]} : vector<16x256xbf16> to vector<16x128xbf16>
    %24 = vector.shape_cast %23 : vector<16x128xbf16> to vector<2x8x128xbf16>
    %25 = vector.extract_strided_slice %15 {offsets = [0, 128], sizes = [16, 128], strides = [1, 1]} : vector<16x256xbf16> to vector<16x128xbf16>
    %26 = vector.shape_cast %25 : vector<16x128xbf16> to vector<2x8x128xbf16>
    %27 = vector.extract_strided_slice %22 {offsets = [0, 0], sizes = [32, 128], strides = [1, 1]} : vector<32x256xbf16> to vector<32x128xbf16>
    %28 = vector.shape_cast %27 : vector<32x128xbf16> to vector<2x16x128xbf16>
    %29 = vector.extract_strided_slice %22 {offsets = [0, 128], sizes = [32, 128], strides = [1, 1]} : vector<32x256xbf16> to vector<32x128xbf16>
    %30 = vector.shape_cast %29 : vector<32x128xbf16> to vector<2x16x128xbf16>
    "tpu.trace_start"() <{level = 10 : i32, message = "bik,bjk->bij"}> : () -> ()
    %cst_18 = arith.constant dense<0.000000e+00> : vector<2x16x8xf32>
    %31 = tpu.matmul %28, %24, %cst_18 {dimension_numbers = #tpu.dot_dimension_numbers<[2], [2], [1], [1], [0, 0, 0, 1, 1, 1], [0], [0]>} : vector<2x16x128xbf16>, vector<2x8x128xbf16>, vector<2x16x8xf32> -> vector<2x16x8xf32>
    %cst_19 = arith.constant 0.000000e+00 : f32
    "tpu.trace_stop"() : () -> ()
    %32 = vector.broadcast %cst_19 : f32 to vector<2x1x8xf32>
    %33 = arith.cmpf ogt, %2, %32 : vector<2x1x8xf32>
    %cst_20 = arith.constant -1.000000e+30 : f32
    %34 = vector.shape_cast %33 : vector<2x1x8xi1> to vector<2x1x8xi1>
    %35 = vector.broadcast %34 : vector<2x1x8xi1> to vector<2x16x8xi1>
    %36 = vector.broadcast %cst_20 : f32 to vector<2x16x8xf32>
    %37 = arith.select %35, %36, %31 : vector<2x16x8xi1>, vector<2x16x8xf32>
    %cst_21 = arith.constant dense<0xFF800000> : vector<2x16xf32>
    %38 = vector.multi_reduction <maximumf>, %37, %cst_21 [2] : vector<2x16x8xf32> to vector<2x16xf32>
    %39 = vector.shape_cast %38 : vector<2x16xf32> to vector<2x16x1xf32>
    %40 = vector.broadcast %39 : vector<2x16x1xf32> to vector<2x16x8xf32>
    %41 = arith.subf %37, %40 : vector<2x16x8xf32>
    %42 = math.exp %41 : vector<2x16x8xf32>
    %cst_22 = arith.constant dense<0.000000e+00> : vector<2x16xf32>
    %43 = vector.multi_reduction <add>, %42, %cst_22 [2] : vector<2x16x8xf32> to vector<2x16xf32>
    %44 = vector.shape_cast %43 : vector<2x16xf32> to vector<2x16x1xf32>
    %45 = tpu.reciprocal %44 {approx = true} : vector<2x16x1xf32> -> vector<2x16x1xf32>
    %46 = arith.truncf %42 : vector<2x16x8xf32> to vector<2x16x8xbf16>
    "tpu.trace_start"() <{level = 10 : i32, message = "bij,bjd->bid"}> : () -> ()
    %cst_23 = arith.constant dense<0.000000e+00> : vector<2x16x128xf32>
    %47 = tpu.matmul %46, %7, %cst_23 {dimension_numbers = #tpu.dot_dimension_numbers<[2], [1], [1], [2], [0, 0, 0, 1, 1, 2], [0], [0]>} : vector<2x16x8xbf16>, vector<2x8x128xbf16>, vector<2x16x128xf32> -> vector<2x16x128xf32>
    "tpu.trace_stop"() : () -> ()
    %48 = vector.broadcast %45 : vector<2x16x1xf32> to vector<2x16x128xf32>
    %49 = arith.mulf %47, %48 : vector<2x16x128xf32>
    "tpu.trace_start"() <{level = 10 : i32, message = "bik,bjk->bij"}> : () -> ()
    %cst_24 = arith.constant dense<0.000000e+00> : vector<2x8x16xf32>
    %50 = tpu.matmul %26, %30, %cst_24 {dimension_numbers = #tpu.dot_dimension_numbers<[2], [2], [1], [1], [0, 0, 0, 1, 1, 1], [0], [0]>} : vector<2x8x128xbf16>, vector<2x16x128xbf16>, vector<2x8x16xf32> -> vector<2x8x16xf32>
    %cst_25 = arith.constant 0.000000e+00 : f32
    "tpu.trace_stop"() : () -> ()
    %51 = vector.broadcast %cst_25 : f32 to vector<2x1x16xf32>
    %52 = arith.cmpf ogt, %3, %51 : vector<2x1x16xf32>
    %cst_26 = arith.constant -1.000000e+30 : f32
    %53 = vector.shape_cast %52 : vector<2x1x16xi1> to vector<2x1x16xi1>
    %54 = vector.broadcast %53 : vector<2x1x16xi1> to vector<2x8x16xi1>
    %55 = vector.broadcast %cst_26 : f32 to vector<2x8x16xf32>
    %56 = arith.select %54, %55, %50 : vector<2x8x16xi1>, vector<2x8x16xf32>
    %cst_27 = arith.constant dense<0xFF800000> : vector<2x8xf32>
    %57 = vector.multi_reduction <maximumf>, %56, %cst_27 [2] : vector<2x8x16xf32> to vector<2x8xf32>
    %58 = vector.shape_cast %57 : vector<2x8xf32> to vector<2x8x1xf32>
    %59 = vector.broadcast %58 : vector<2x8x1xf32> to vector<2x8x16xf32>
    %60 = arith.subf %56, %59 : vector<2x8x16xf32>
    %61 = math.exp %60 : vector<2x8x16xf32>
    %cst_28 = arith.constant dense<0.000000e+00> : vector<2x8xf32>
    %62 = vector.multi_reduction <add>, %61, %cst_28 [2] : vector<2x8x16xf32> to vector<2x8xf32>
    %63 = vector.shape_cast %62 : vector<2x8xf32> to vector<2x8x1xf32>
    %64 = tpu.reciprocal %63 {approx = true} : vector<2x8x1xf32> -> vector<2x8x1xf32>
    %65 = arith.truncf %61 : vector<2x8x16xf32> to vector<2x8x16xbf16>
    "tpu.trace_start"() <{level = 10 : i32, message = "bij,bjd->bid"}> : () -> ()
    %cst_29 = arith.constant dense<0.000000e+00> : vector<2x8x128xf32>
    %66 = tpu.matmul %65, %8, %cst_29 {dimension_numbers = #tpu.dot_dimension_numbers<[2], [1], [1], [2], [0, 0, 0, 1, 1, 2], [0], [0]>} : vector<2x8x16xbf16>, vector<2x16x128xbf16>, vector<2x8x128xf32> -> vector<2x8x128xf32>
    "tpu.trace_stop"() : () -> ()
    %67 = arith.truncf %49 : vector<2x16x128xf32> to vector<2x16x128xbf16>
    "tpu.trace_start"() <{level = 10 : i32, message = "bij,bjd->bid"}> : () -> ()
    %cst_30 = arith.constant dense<0.000000e+00> : vector<2x8x128xf32>
    %68 = tpu.matmul %65, %67, %cst_30 {dimension_numbers = #tpu.dot_dimension_numbers<[2], [1], [1], [2], [0, 0, 0, 1, 1, 2], [0], [0]>} : vector<2x8x16xbf16>, vector<2x16x128xbf16>, vector<2x8x128xf32> -> vector<2x8x128xf32>
    "tpu.trace_stop"() : () -> ()
    %c0_31 = arith.constant 0 : index
    %c0_32 = arith.constant 0 : index
    %c0_33 = arith.constant 0 : index
    %69 = vector.load %arg7[%c0_31, %c0_32, %c0_33] : memref<2x8x384xf32, #tpu.memory_space<vmem>>, vector<2x8x128xf32>
    tpu.vector_store %arg7[%c0_31, %c0_32, %c0_33], %0 {strides = array<i32>} : memref<2x8x384xf32, #tpu.memory_space<vmem>>, vector<2x8x128xf32>,
    %70 = vector.broadcast %64 : vector<2x8x1xf32> to vector<2x8x128xf32>
    %71 = arith.mulf %66, %70 : vector<2x8x128xf32>
    %c0_34 = arith.constant 0 : index
    %c0_35 = arith.constant 0 : index
    %c128 = arith.constant 128 : index
    %72 = vector.load %arg7[%c0_34, %c0_35, %c128] : memref<2x8x384xf32, #tpu.memory_space<vmem>>, vector<2x8x128xf32>
    tpu.vector_store %arg7[%c0_34, %c0_35, %c128], %71 {strides = array<i32>} : memref<2x8x384xf32, #tpu.memory_space<vmem>>, vector<2x8x128xf32>,
    %73 = vector.broadcast %64 : vector<2x8x1xf32> to vector<2x8x128xf32>
    %74 = arith.mulf %68, %73 : vector<2x8x128xf32>
    %c0_36 = arith.constant 0 : index
    %c0_37 = arith.constant 0 : index
    %c256 = arith.constant 256 : index
    %75 = vector.load %arg7[%c0_36, %c0_37, %c256] : memref<2x8x384xf32, #tpu.memory_space<vmem>>, vector<2x8x128xf32>
    tpu.vector_store %arg7[%c0_36, %c0_37, %c256], %74 {strides = array<i32>} : memref<2x8x384xf32, #tpu.memory_space<vmem>>, vector<2x8x128xf32>,
    return
  }
  func.func @transform_0(%arg0: i32) -> (i32, i32, i32) {
    %c0_i32 = arith.constant 0 : i32
    %c0_i32_0 = arith.constant 0 : i32
    %c0_i32_1 = arith.constant 0 : i32
    return %arg0, %c0_i32, %c0_i32_0 : i32, i32, i32
  }
  func.func @transform_1(%arg0: i32) -> (i32, i32, i32) {
    %c0_i32 = arith.constant 0 : i32
    %c0_i32_0 = arith.constant 0 : i32
    %c0_i32_1 = arith.constant 0 : i32
    return %arg0, %c0_i32, %c0_i32_0 : i32, i32, i32
  }
  func.func @transform_2(%arg0: i32) -> (i32, i32, i32) {
    %c0_i32 = arith.constant 0 : i32
    %c0_i32_0 = arith.constant 0 : i32
    %c0_i32_1 = arith.constant 0 : i32
    return %arg0, %c0_i32, %c0_i32_0 : i32, i32, i32
  }
  func.func @transform_3(%arg0: i32) -> (i32, i32, i32) {
    %c0_i32 = arith.constant 0 : i32
    %c0_i32_0 = arith.constant 0 : i32
    %c0_i32_1 = arith.constant 0 : i32
    return %arg0, %c0_i32, %c0_i32_0 : i32, i32, i32
  }
  func.func @transform_4(%arg0: i32) -> (i32, i32) {
    %c0_i32 = arith.constant 0 : i32
    %c0_i32_0 = arith.constant 0 : i32
    %c0_i32_1 = arith.constant 0 : i32
    return %c0_i32, %c0_i32_0 : i32, i32
  }
  func.func @transform_5(%arg0: i32) -> (i32, i32) {
    %c0_i32 = arith.constant 0 : i32
    %c0_i32_0 = arith.constant 0 : i32
    %c0_i32_1 = arith.constant 0 : i32
    return %c0_i32, %c0_i32_0 : i32, i32
  }
  func.func @transform_6(%arg0: i32) -> (i32, i32, i32) {
    %c0_i32 = arith.constant 0 : i32
    %c0_i32_0 = arith.constant 0 : i32
    %c0_i32_1 = arith.constant 0 : i32
    return %arg0, %c0_i32, %c0_i32_0 : i32, i32, i32
  }
}

</mosaic_0001>

<bundles_post_ra>
// kernel: tpu_custom_call.1
= control target key start
LH: loop header
LB: loop body
LE: loop exit
PB: predicated region body
PF: predicated region fallthrough
CT: control target
= control target key end

     0   :  { %11 = vsyncpa [#allocation3], 0  ;;  %s1240_s0 = inlined_call_operand.hbm [shape: f32[2,8,128], index: 0, kind: input, shape index: {}]   ;;  %s1241_s1 = inlined_call_operand.hbm [shape: f32[2,16,128], index: 1, kind: input, shape index: {}]   ;;  %s1242_s2 = inlined_call_operand.vmem [shape: f32[2,1,8], index: 2, kind: input, shape index: {}]   ;;  %s1243_s3 = inlined_call_operand.vmem [shape: f32[2,1,16], index: 3, kind: input, shape index: {}]   ;;  %s1244_s4 = inlined_call_operand.hbm [shape: f32[128,256], index: 4, kind: input, shape index: {}]   ;;  %s1245_s5 = inlined_call_operand.vmem [shape: f32[1,256], index: 5, kind: input, shape index: {}]   ;;  %s1246_s6 = inlined_call_operand.hbm [shape: f32[2,8,384], index: 6, kind: output, shape index: {}]  }
   0x1   :  { %12 = vsyncpa [#allocation6], 0 }
   0x2   :  { %13 = vsyncpa [#allocation4], 0  ;;  %s1050_s21 = smov [#allocation5]   ;;  %s1051_s23 = smov [#allocation2]  }
   0x3   :  { %s31_s22 = sshll.u32 %s1050_s21, 4  ;;  %s19_s24 = sshll.u32 %s1051_s23, 4  ;;  %s32_s22 = int_to_ptr.vmem [resolvable:$true] %s31_s22  ;;  %s20_s24 = int_to_ptr.vmem [resolvable:$true] %s19_s24 }
   0x4   :  { %s972_s25 = scalar_lea.vmem %s32_s22, 512  ;;  %p977_p1 = scmp.lt.s32.totalorder %s32_s22, %s32_s22 }
   0x5   :  { %p973_p0 = scmp.ne.s32.totalorder %s32_s22, %s972_s25  ;;  %p978_p2 = scmp.lt.s32.totalorder %s972_s25, %s972_s25 }
   0x7   :  { %p979_p3 = por %p978_p2, %p977_p1 }
   0x9   :  { %p980_p4 = pnand %p979_p3, %p973_p0 }
   0xb   :  { %983 = shalt.err (!%p980_p4)
}
   0xc   :  { %s1052_s26 = smov 128   ;;  %s1053_s27 = smov 8  }
   0xd   :  { %37 = dma.hbm_to_vmem [thread:$0]  %s1241_s1, 512, %s32_s22, [#allocation6], %s1052_s26, %s1052_s26, %s1053_s27  }
   0xe   :  { %s992_s30 = scalar_lea.vmem %s20_s24, 256  ;;  %p997_p6 = scmp.lt.s32.totalorder %s20_s24, %s20_s24 }
   0xf   :  { %p993_p5 = scmp.ne.s32.totalorder %s20_s24, %s992_s30  ;;  %p998_p7 = scmp.lt.s32.totalorder %s992_s30, %s992_s30 }
  0x11   :  { %p999_p8 = por %p998_p7, %p997_p6 }
  0x13   :  { %p1000_p9 = pnand %p999_p8, %p993_p5 }
  0x15   :  { %1003 = shalt.err (!%p1000_p9)
}
  0x16   :  { %25 = dma.hbm_to_vmem [thread:$0]  %s1240_s0, 256, %s20_s24, [#allocation3], %s1052_s26, %s1052_s26, %s1053_s27  }
  0x17   :  { %s1054_s9 = smov [#allocation7]  }
  0x18   :  { %s47_s10 = sshll.u32 %s1054_s9, 4  ;;  %s48_s10 = int_to_ptr.vmem [resolvable:$true] %s47_s10 }
  0x19   :  { %s1012_s11 = scalar_lea.vmem %s48_s10, 4096  ;;  %p1017_p11 = scmp.lt.s32.totalorder %s48_s10, %s48_s10 }
  0x1a   :  { %p1013_p10 = scmp.ne.s32.totalorder %s48_s10, %s1012_s11  ;;  %p1018_p12 = scmp.lt.s32.totalorder %s1012_s11, %s1012_s11 }
  0x1c   :  { %p1019_p13 = por %p1018_p12, %p1017_p11 }
  0x1e   :  { %p1020_p0 = pnand %p1019_p13, %p1013_p10 }
  0x20   :  { %1023 = shalt.err (!%p1020_p0)
}
  0x21   :  { %s1055_s1 = smov 256   ;;  %s1056_s12 = smov 16  }
  0x22   :  { %53 = dma.hbm_to_vmem [thread:$0]  %s1244_s4, 4096, %s48_s10, [#allocation6], %s1055_s1, %s1055_s1, %s1056_s12  }
  0x23   :  { %1044 = dma.done.wait [#allocation3], 256  }
  0x24   :  { %1045 = vsyncadd [#allocation3], 4294967040 }
  0x25   :  { %1046 = dma.done.wait [#allocation6], 4608  }
  0x26   :  { %1047 = vsyncadd [#allocation6], 4294962688  ;;  %v1057_v0 = vmov 0   ;;  %v105_v1 = vld [vmem:[#allocation7 + $0xe8] sm:$0xff]  ;;  %v107_v2 = vld [vmem:[#allocation7 + $0xf8] sm:$0xff]  ;;  %v1058_v58 = vmov 0.0   ;;  %v130_v59 = vlaneseq }
  0x27   :  { %178 = vmatprep.mubr.bf16.mxu0 %v1057_v0  ;;  %227 = vmatprep.mubr.bf16.mxu1 %v1057_v0  ;;  %v104_v3 = vld [vmem:[#allocation7 + $0xe0] sm:$0xff]  ;;  %v123_v4 = vpack.c.bf16 %v107_v2, %v105_v1  ;;  %v106_v5 = vld [vmem:[#allocation7 + $0xf0] sm:$0xff]  ;;  %v101_v6 = vld [vmem:[#allocation7 + $0xc8] sm:$0xff]  ;;  %vm1059_vm0 = vmmov 0   ;;  %vm374_vm4 = vcmask 64512   ;;  %vm420_vm6 = vcmask 1043456  }
  0x28   :  { %v103_v7 = vld [vmem:[#allocation7 + $0xd8] sm:$0xff]  ;;  %v122_v8 = vpack.c.bf16 %v106_v5, %v104_v3  ;;  %v100_v10 = vld [vmem:[#allocation7 + $0xc0] sm:$0xff]  ;;  %v102_v11 = vld [vmem:[#allocation7 + $0xd0] sm:$0xff]  ;;  %v131_v60 = vshrl.u32 %v130_v59, 7  ;;  %vm612_vm10 = vcmask 130048  }
  0x29   :  { %v121_v9 = vpack.c.bf16 %v103_v7, %v101_v6  ;;  %v97_v12 = vld [vmem:[#allocation7 + $0xa8] sm:$0xff]  ;;  %146 = vmatprep.subr.bf16.mxu0 %v123_v4  ;;  %195 = vmatprep.subr.bf16.mxu1 %v123_v4  ;;  %v99_v13 = vld [vmem:[#allocation7 + $0xb8] sm:$0xff]  ;;  %v120_v14 = vpack.c.bf16 %v102_v11, %v100_v10  ;;  %v96_v16 = vld [vmem:[#allocation7 + $0xa0] sm:$0xff] }
  0x2a   :  { %147 = vmatpush1.bf16.msra.mxu0 %v122_v8  ;;  %196 = vmatpush1.bf16.msra.mxu1 %v122_v8  ;;  %v119_v15 = vpack.c.bf16 %v99_v13, %v97_v12  ;;  %v98_v17 = vld [vmem:[#allocation7 + $0xb0] sm:$0xff]  ;;  %v93_v18 = vld [vmem:[#allocation7 + $0x88] sm:$0xff]  ;;  %v95_v19 = vld [vmem:[#allocation7 + $0x98] sm:$0xff]  ;;  %v1130_v61 = vsub.s32 0, %v131_v60  ;;  %v136_v1 = vsub.s32 1, %v131_v60 }
  0x2b   :  { %148 = vmatprep.subr.bf16.mxu0 %v121_v9  ;;  %197 = vmatprep.subr.bf16.mxu1 %v121_v9  ;;  %v118_v20 = vpack.c.bf16 %v98_v17, %v96_v16  ;;  %v117_v21 = vpack.c.bf16 %v95_v19, %v93_v18  ;;  %v92_v22 = vld [vmem:[#allocation7 + $0x80] sm:$0xff]  ;;  %v94_v23 = vld [vmem:[#allocation7 + $0x90] sm:$0xff]  ;;  %v89_v24 = vld [vmem:[#allocation7 + $0x68] sm:$0xff] }
  0x2c   :  { %v91_v25 = vld [vmem:[#allocation7 + $0x78] sm:$0xff]  ;;  %v1109_v26 = vld [vmem:[#allocation2] sm:$0xff]  ;;  %v116_v28 = vpack.c.bf16 %v94_v23, %v92_v22  ;;  %v88_v30 = vld [vmem:[#allocation7 + $0x60] sm:$0xff] }
  0x2d   :  { %v1111_v27 = vld [vmem:[#allocation2 + $0x8] sm:$0xff]  ;;  %803 = vst [vmem:[#allocation8] sm:$0xff] %v1109_v26  ;;  %v115_v29 = vpack.c.bf16 %v91_v25, %v89_v24  ;;  %v90_v31 = vld [vmem:[#allocation7 + $0x70] sm:$0xff]  ;;  %v85_v32 = vld [vmem:[#allocation7 + $0x48] sm:$0xff] }
  0x2e   :  { %149 = vmatpush1.bf16.msra.mxu0 %v120_v14  ;;  %198 = vmatpush1.bf16.msra.mxu1 %v120_v14  ;;  %804 = vst [vmem:[#allocation8 + $0x18] sm:$0xff] %v1111_v27  ;;  %v87_v33 = vld [vmem:[#allocation7 + $0x58] sm:$0xff]  ;;  %v114_v34 = vpack.c.bf16 %v90_v31, %v88_v30  ;;  %v84_v36 = vld [vmem:[#allocation7 + $0x40] sm:$0xff]  ;;  %v86_v37 = vld [vmem:[#allocation7 + $0x50] sm:$0xff]  ;;  %v842_v53 = vpack.c.bf16 %v1111_v27, %v1109_v26 }
  0x2f   :  { %150 = vmatprep.subr.bf16.mxu0 %v119_v15  ;;  %199 = vmatprep.subr.bf16.mxu1 %v119_v15  ;;  %v113_v35 = vpack.c.bf16 %v87_v33, %v85_v32  ;;  %v81_v38 = vld [vmem:[#allocation7 + $0x28] sm:$0xff]  ;;  %v83_v39 = vld [vmem:[#allocation7 + $0x38] sm:$0xff]  ;;  %v112_v40 = vpack.c.bf16 %v86_v37, %v84_v36  ;;  %v80_v42 = vld [vmem:[#allocation7 + $0x20] sm:$0xff] }
  0x30   :  { %v111_v41 = vpack.c.bf16 %v83_v39, %v81_v38  ;;  %v82_v43 = vld [vmem:[#allocation7 + $0x30] sm:$0xff]  ;;  %v77_v44 = vld [vmem:[#allocation7 + $0x8] sm:$0xff]  ;;  %v79_v45 = vld [vmem:[#allocation7 + $0x18] sm:$0xff] }
  0x31   :  { %v110_v46 = vpack.c.bf16 %v82_v43, %v80_v42  ;;  %v109_v47 = vpack.c.bf16 %v79_v45, %v77_v44  ;;  %v76_v48 = vld [vmem:[#allocation7] sm:$0xff]  ;;  %v78_v49 = vld [vmem:[#allocation7 + $0x10] sm:$0xff]  ;;  %v69_v52 = vld [vmem:[#allocation5 + $0x8] sm:$0xff] }
  0x32   :  { %151 = vmatpush1.bf16.msra.mxu0 %v118_v20  ;;  %200 = vmatpush1.bf16.msra.mxu1 %v118_v20  ;;  %v108_v50 = vpack.c.bf16 %v78_v49, %v76_v48  ;;  %v68_v51 = vld [vmem:[#allocation5] sm:$0xff]  ;;  %v70_v55 = vld [vmem:[#allocation5 + $0x10] sm:$0xff]  ;;  %v71_v56 = vld [vmem:[#allocation5 + $0x18] sm:$0xff] }
  0x33   :  { %152 = vmatprep.subr.bf16.mxu0 %v117_v21  ;;  %201 = vmatprep.subr.bf16.mxu1 %v117_v21  ;;  %v1117_v54 = vpack.c.bf16 %v69_v52, %v68_v51  ;;  %v1121_v57 = vpack.c.bf16 %v71_v56, %v70_v55  ;;  %v124_v62 = vld [vmem:[%s1245_s5] sm:$0x3] }
  0x34   :  { %v133_v63 = vrot.slane %v124_v62, %v1130_v61  ;;  %v1136_v5 = vrot.slane %v124_v62, %v136_v1  ;;  %v72_v36 = vld [vmem:[%s1242_s2] sm:$0x1]  ;;  %v73_v38 = vld [vmem:[%s1242_s2 + $0x1] sm:$0x1] }
  0x35   :  { %vm356_vm1 = vcmp.gt.f32.partialorder %v72_v36, 0.0  ;;  %vm357_vm2 = vcmp.gt.f32.partialorder %v73_v38, 0.0  ;;  %v75_v36 = vld [vmem:[%s1243_s3 + $0x1] sm:$0x1] }
  0x36   :  { %153 = vmatpush1.bf16.msra.mxu0 %v116_v28  ;;  %202 = vmatpush1.bf16.msra.mxu1 %v116_v28  ;;  %v358_v37 = vsel %vm356_vm1, 1, %v1057_v0  ;;  %vm597_vm8 = vcmp.gt.f32.partialorder %v75_v36, 0.0 }
  0x37   :  { %154 = vmatprep.subr.bf16.mxu0 %v115_v29  ;;  %203 = vmatprep.subr.bf16.mxu1 %v115_v29  ;;  %v363_v39 = vrot.slane %v358_v37, %v1130_v61 }
  0x39   :  { %vm368_vm3 = vcmp.eq.s32.totalorder %v363_v39, 1 }
  0x3a   :  { %155 = vmatpush1.bf16.msra.mxu0 %v114_v34  ;;  %204 = vmatpush1.bf16.msra.mxu1 %v114_v34 }
  0x3b   :  { %156 = vmatprep.subr.bf16.mxu0 %v113_v35  ;;  %205 = vmatprep.subr.bf16.mxu1 %v113_v35 }
  0x3e   :  { %157 = vmatpush1.bf16.msra.mxu0 %v112_v40  ;;  %206 = vmatpush1.bf16.msra.mxu1 %v112_v40 }
  0x3f   :  { %158 = vmatprep.subr.bf16.mxu0 %v111_v41  ;;  %207 = vmatprep.subr.bf16.mxu1 %v111_v41  ;;  %v359_v41 = vsel %vm357_vm2, 1, %v1057_v0 }
  0x42   :  { %159 = vmatpush1.bf16.msra.mxu0 %v110_v46  ;;  %208 = vmatpush1.bf16.msra.mxu1 %v110_v46  ;;  %v367_v46 = vrot.slane %v359_v41, %v1130_v61 }
  0x43   :  { %160 = vmatprep.subr.bf16.mxu0 %v109_v47  ;;  %209 = vmatprep.subr.bf16.mxu1 %v109_v47 }
  0x44   :  { %vm369_vm5 = vcmp.eq.s32.totalorder %v367_v46, 1 }
  0x46   :  { %161 = vmatpush1.bf16.msra.mxu0 %v108_v50  ;;  %210 = vmatpush1.bf16.msra.mxu1 %v108_v50 }
  0x47   :  { %867 = vmatprep.subr.bf16.mxu0 %v1058_v58  ;;  %879 = vmatprep.subr.bf16.mxu1 %v1058_v58 }
  0x49   :  { %179 = vmatmul.mubr.bf16.vlgmr.msra.gmra.mxu0 %v842_v53  ;;  %228 = vmatmul.mubr.bf16.vlgmr.msra.gmra.mxu1 %v1117_v54 }
  0x4a   :  { %237 = vmatprep.mubr.bf16.mxu1 %v1057_v0  ;;  %869 = vmatprep.mubr.msk.bf16.mxu0 %vm1059_vm0, %v1058_v58 }
  0x51   :  { %238 = vmatmul.mubr.bf16.gmra.mxu1 %v1121_v57 }
  0x52   :  { %881 = vmatprep.mubr.msk.bf16.mxu1 %vm1059_vm0, %v1058_v58 }
 0x109   :  { %v180_v2 = vpop.f32.mrf.mxu0  ;;  %v229_v3 = vpop.f32.mrf.mxu1 }
 0x10a   :  { %v181_v4 = vadd.f32 %v180_v2, %v133_v63  ;;  %v230_v9 = vadd.f32 %v229_v3, %v133_v63  ;;  %v126_v2 = vpack.c.bf16 %v1111_v27, %v1111_v27 }
 0x10b   :  { %v1138_v6 = vpop.f32.mrf.mxu0  ;;  %v231_v7 = vpop.f32.mrf.mxu1 }
 0x10c   :  { %v189_v8 = vmax.f32 %v181_v4, 0.0  ;;  %v232_v13 = vadd.f32 %v231_v7, %v1136_v5  ;;  %v248_v18 = vmax.f32 %v230_v9, 0.0  ;;  %v469_v3 = vsel %vm420_vm6, %v126_v2, 0 }
 0x10d   :  { %v184_v10 = vpop.f32.mrf.mxu0  ;;  %v233_v11 = vpop.f32.mrf.mxu1 }
 0x10e   :  { %v843_v12 = vpack.c.bf16 %v189_v8, %v189_v8  ;;  %v185_v14 = vadd.f32 %v184_v10, %v133_v63  ;;  %v234_v15 = vadd.f32 %v233_v11, %v133_v63  ;;  %v249_v21 = vmax.f32 %v232_v13, 0.0 }
 0x10f   :  { %v235_v16 = vpop.f32.mrf.mxu1  ;;  %v1160_v40 = vpop.f32.mrf.mxu0 }
 0x110   :  { %v236_v17 = vadd.f32 %v235_v16, %v1136_v5  ;;  %868 = vmatpush3.bf16.xpose.msra.mxu0 %v843_v12  ;;  %v250_v19 = vmax.f32 %v234_v15, 0.0  ;;  %v191_v22 = vmax.f32 %v185_v14, 0.0 }
 0x111   :  { %v239_v20 = vpop.f32.mrf.mxu1  ;;  %873 = vmatprep.subr.bf16.mxu0 %v1058_v58 }
 0x112   :  { %v251_v23 = vmax.f32 %v236_v17, 0.0  ;;  %v256_v28 = vpack.c.bf16 %v250_v19, %v248_v18  ;;  %v240_v29 = vadd.f32 %v239_v20, %v133_v63  ;;  %v844_v31 = vpack.c.bf16 %v191_v22, %v191_v22 }
 0x113   :  { %v1143_v24 = vpop.f32.mrf.mxu1  ;;  %v183_v19 = vadd.f32 %v1138_v6, %v1136_v5 }
 0x114   :  { %v1145_v25 = vpack.c.bf16 %v251_v23, %v249_v21  ;;  %v252_v33 = vmax.f32 %v240_v29, 0.0  ;;  %v242_v22 = vadd.f32 %v1143_v24, %v1136_v5 }
 0x115   :  { %v243_v30 = vpop.f32.mrf.mxu1  ;;  %v190_v23 = vmax.f32 %v183_v19, 0.0 }
 0x116   :  { %v244_v32 = vadd.f32 %v243_v30, %v133_v63  ;;  %v125_v63 = vpack.c.bf16 %v1109_v26, %v1109_v26  ;;  %v253_v30 = vmax.f32 %v242_v22, 0.0 }
 0x117   :  { %870 = vmatmul.mubr.bf16.vlgmr.msra.gmra.mxu0 %v256_v28  ;;  %v245_v17 = vpop.f32.mrf.mxu1 }
 0x118   :  { %874 = vmatpush3.bf16.xpose.msra.mxu0 %v844_v31  ;;  %875 = vmatprep.mubr.msk.bf16.mxu0 %vm1059_vm0, %v1058_v58  ;;  %v254_v34 = vmax.f32 %v244_v32, 0.0  ;;  %v422_v1 = vsel %vm420_vm6, %v125_v63, 0  ;;  %v246_v21 = vadd.f32 %v245_v17, %v1136_v5  ;;  %v845_v31 = vpack.c.bf16 %v190_v23, %v190_v23 }
 0x119   :  { %885 = vmatprep.subr.bf16.mxu0 %v1058_v58  ;;  %880 = vmatpush3.bf16.msra.mxu1 %v422_v1  ;;  %v187_v32 = vadd.f32 %v1160_v40, %v1136_v5  ;;  %v599_v40 = vsel %vm597_vm8, 1, %v1057_v0 }
 0x11a   :  { %v258_v35 = vpack.c.bf16 %v254_v34, %v252_v33  ;;  %891 = vmatprep.subr.bf16.mxu1 %v1058_v58  ;;  %v255_v28 = vmax.f32 %v246_v21, 0.0 }
 0x11b   :  { %v192_v24 = vmax.f32 %v187_v32, 0.0 }
 0x11c   :  { %v259_v34 = vpack.c.bf16 %v255_v28, %v253_v30 }
 0x11d   :  { %v846_v5 = vpack.c.bf16 %v192_v24, %v192_v24 }
 0x11f   :  { %876 = vmatmul.mubr.bf16.vlgmr.msra.gmra.mxu0 %v258_v35 }
 0x120   :  { %887 = vmatprep.mubr.msk.bf16.mxu0 %vm1059_vm0, %v1058_v58  ;;  %886 = vmatpush3.bf16.msra.mxu0 %v469_v3 }
 0x121   :  { %897 = vmatprep.subr.bf16.mxu0 %v1058_v58 }
 0x1d7   :  { %v308_v42 = vpop.f32.mrf.mxu0 }
 0x1d8   :  { %v370_v43 = vsel %vm368_vm3, -1e+30, %v308_v42 }
 0x1d9   :  { %v871_v44 = vpop.f32.mrf.mxu0  ;;  %v375_v45 = vsel %vm374_vm4, %v370_v43, -inf }
 0x1da   :  { %376 = vmax.xlane.f32.xlu0 %v375_v45 }
 0x1db   :  { %v311_v47 = vpop.f32.mrf.mxu0 }
 0x1dc   :  { %v371_v48 = vsel %vm368_vm3, -1e+30, %v311_v47  ;;  %v607_v47 = vrot.slane %v599_v40, %v1130_v61 }
 0x1dd   :  { %v872_v49 = vpop.f32.mrf.mxu0  ;;  %v378_v50 = vsel %vm374_vm4, %v371_v48, -inf }
 0x1de   :  { %379 = vmax.xlane.f32.xlu0 %v378_v50  ;;  %vm609_vm11 = vcmp.eq.s32.totalorder %v607_v47, 1 }
 0x1df   :  { %v349_v51 = vpop.f32.mrf.mxu0 }
 0x1e0   :  { %v372_v52 = vsel %vm369_vm5, -1e+30, %v349_v51 }
 0x1e1   :  { %v877_v53 = vpop.f32.mrf.mxu0  ;;  %v381_v55 = vsel %vm374_vm4, %v372_v52, -inf }
 0x1e2   :  { %382 = vmax.xlane.f32.xlu1 %v381_v55 }
 0x1e3   :  { %v352_v56 = vpop.f32.mrf.mxu0 }
 0x1e4   :  { %v373_v59 = vsel %vm369_vm5, -1e+30, %v352_v56 }
 0x1e5   :  { %v878_v60 = vpop.f32.mrf.mxu0  ;;  %v384_v62 = vsel %vm374_vm4, %v373_v59, -inf }
 0x1e6   :  { %385 = vmax.xlane.f32.xlu1 %v384_v62 }
 0x263   :  { %v377_v4 = vpop.xlane.xlu0 %376 }
 0x264   :  { %v387_v7 = vsub.f32 %v370_v43, %v377_v4 }
 0x266   :  { %v391_v8 = vmul.f32 1.442695, %v387_v7 }
 0x267   :  { %v380_v9 = vpop.xlane.xlu0 %379 }
 0x268   :  { %v388_v10 = vsub.f32 %v371_v48, %v380_v9  ;;  %940 = vpow2.f32 %v391_v8 }
 0x26a   :  { %v393_v11 = vmul.f32 1.442695, %v388_v10 }
 0x26b   :  { %v383_v26 = vpop.xlane.xlu1 %382 }
 0x26c   :  { %942 = vpow2.f32 %v393_v11  ;;  %v389_v12 = vsub.f32 %v372_v52, %v383_v26 }
 0x26e   :  { %v395_v13 = vmul.f32 1.442695, %v389_v12 }
 0x26f   :  { %v386_v14 = vpop.xlane.xlu1 %385 }
 0x270   :  { %v390_v15 = vsub.f32 %v373_v59, %v386_v14  ;;  %944 = vpow2.f32 %v395_v13 }
 0x272   :  { %v397_v16 = vmul.f32 1.442695, %v390_v15 }
 0x274   :  { %946 = vpow2.f32 %v397_v16 }
 0x275   :  { %v941_v27 = vpop.eup %940 }
 0x276   :  { %v399_v52 = vsel %vm374_vm4, %v941_v27, 0.0 }
 0x279   :  { %v1174_v18 = vpop.eup %942 }
 0x27a   :  { %v415_v20 = vpack.c.bf16 %v1174_v18, %v941_v27  ;;  %v402_v62 = vsel %vm374_vm4, %v1174_v18, 0.0 }
 0x27c   :  { %882 = vmatmul.mubr.msk.bf16.vlgmr.msra.gmra.mxu1 %vm374_vm4, %v415_v20 }
 0x27d   :  { %892 = vmatpush3.bf16.xpose.msra.mxu1 %v1145_v25  ;;  %893 = vmatprep.mubr.msk.bf16.mxu1 %vm1059_vm0, %v1058_v58  ;;  %v945_v29 = vpop.eup %944 }
 0x27e   :  { %903 = vmatprep.subr.bf16.mxu1 %v1058_v58  ;;  %v405_v59 = vsel %vm374_vm4, %v945_v29, 0.0 }
 0x281   :  { %v947_v6 = vpop.eup %946 }
 0x282   :  { %v416_v33 = vpack.c.bf16 %v947_v6, %v945_v29  ;;  %v408_v63 = vsel %vm374_vm4, %v947_v6, 0.0 }
 0x284   :  { %888 = vmatmul.mubr.msk.bf16.vlgmr.msra.gmra.mxu0 %vm374_vm4, %v416_v33  ;;  %894 = vmatmul.mubr.bf16.vlgmr.msra.gmra.mxu1 %v845_v31 }
 0x285   :  { %898 = vmatpush3.bf16.xpose.msra.mxu0 %v259_v34  ;;  %899 = vmatprep.mubr.msk.bf16.mxu0 %vm1059_vm0, %v1058_v58 }
 0x286   :  { %904 = vmatpush3.bf16.msra.mxu1 %v1117_v54  ;;  %905 = vmatprep.mubr.msk.bf16.mxu1 %vm1059_vm0, %v1058_v58  ;;  %v74_v54 = vld [vmem:[%s1243_s3] sm:$0x1]  ;;  %s1060_s3 = smov [#allocation8]  }
 0x287   :  { %909 = vmatprep.subr.bf16.mxu0 %v1058_v58  ;;  %915 = vmatprep.subr.bf16.mxu1 %v1058_v58  ;;  %vm596_vm7 = vcmp.gt.f32.partialorder %v74_v54, 0.0  ;;  %s818_s21 = sshll.u32 %s1060_s3, 4  ;;  %s819_s21 = int_to_ptr.vmem [resolvable:$true] %s818_s21 }
 0x288   :  { %v598_v25 = vsel %vm596_vm7, 1, %v1057_v0  ;;  %s1024_s22 = scalar_lea.vmem %s819_s21, 768  ;;  %p1029_p2 = scmp.lt.s32.totalorder %s819_s21, %s819_s21 }
 0x289   :  { %p1025_p1 = scmp.ne.s32.totalorder %s819_s21, %s1024_s22  ;;  %p1030_p3 = scmp.lt.s32.totalorder %s1024_s22, %s1024_s22 }
 0x28b   :  { %p1031_p4 = por %p1030_p3, %p1029_p2 }
 0x28c   :  { %900 = vmatmul.mubr.bf16.vlgmr.msra.gmra.mxu0 %v846_v5 }
 0x28d   :  { %910 = vmatpush3.bf16.msra.mxu0 %v1121_v57  ;;  %911 = vmatprep.mubr.msk.bf16.mxu0 %vm1059_vm0, %v1058_v58  ;;  %v603_v57 = vrot.slane %v598_v25, %v1130_v61  ;;  %p1032_p5 = pnand %p1031_p4, %p1025_p1 }
 0x28e   :  { %921 = vmatprep.subr.bf16.mxu0 %v1058_v58 }
 0x28f   :  { %vm608_vm9 = vcmp.eq.s32.totalorder %v603_v57, 1 }
 0x33c   :  { %v1205_v35 = vpop.f32.mrf.mxu1 }
 0x33e   :  { %v883_v37 = vpop.f32.mrf.mxu1 }
 0x340   :  { %v1211_v38 = vpop.f32.mrf.mxu1 }
 0x342   :  { %v884_v39 = vpop.f32.mrf.mxu1 }
 0x344   :  { %v1214_v41 = vpop.f32.mrf.mxu0  ;;  %v550_v42 = vpop.f32.mrf.mxu1 }
 0x345   :  { %v610_v43 = vsel %vm608_vm9, -1e+30, %v550_v42 }
 0x346   :  { %v889_v44 = vpop.f32.mrf.mxu0  ;;  %v895_v45 = vpop.f32.mrf.mxu1  ;;  %v613_v46 = vsel %vm612_vm10, %v610_v43, -inf }
 0x347   :  { %614 = vmax.xlane.f32.xlu0 %v613_v46 }
 0x348   :  { %v508_v48 = vpop.f32.mrf.mxu0  ;;  %v553_v49 = vpop.f32.mrf.mxu1 }
 0x34a   :  { %v890_v50 = vpop.f32.mrf.mxu0  ;;  %v896_v51 = vpop.f32.mrf.mxu1 }
 0x34b   :  { %400 = vadd.xlane.f32.xlu0 %v399_v52 }
 0x34c   :  { %v590_v0 = vpop.f32.mrf.mxu0 }
 0x34d   :  { %v611_v53 = vsel %vm609_vm11, -1e+30, %v590_v0 }
 0x34e   :  { %v901_v55 = vpop.f32.mrf.mxu0  ;;  %v616_v56 = vsel %vm612_vm10, %v611_v53, -inf }
 0x34f   :  { %617 = vmax.xlane.f32.xlu1 %v616_v56  ;;  %406 = vadd.xlane.f32.xlu0 %v405_v59 }
 0x350   :  { %v593_v60 = vpop.f32.mrf.mxu0 }
 0x352   :  { %v902_v61 = vpop.f32.mrf.mxu0 }
 0x353   :  { %403 = vadd.xlane.f32.xlu1 %v402_v62 }
 0x357   :  { %409 = vadd.xlane.f32.xlu1 %v408_v63 }
 0x3d0   :  { %v615_v1 = vpop.xlane.xlu0 %614 }
 0x3d1   :  { %v619_v2 = vsub.f32 %v610_v43, %v615_v1 }
 0x3d3   :  { %v621_v3 = vmul.f32 1.442695, %v619_v2 }
 0x3d4   :  { %v401_v4 = vpop.xlane.xlu0 %400 }
 0x3d5   :  { %948 = vpow2.f32 %v621_v3 }
 0x3d6   :  { %950 = vrcp.f32 %v401_v4 }
 0x3d8   :  { %v618_v7 = vpop.xlane.xlu1 %617  ;;  %v407_v10 = vpop.xlane.xlu0 %406 }
 0x3d9   :  { %v620_v8 = vsub.f32 %v611_v53, %v618_v7 }
 0x3db   :  { %v623_v9 = vmul.f32 1.442695, %v620_v8 }
 0x3dc   :  { %v404_v11 = vpop.xlane.xlu1 %403 }
 0x3dd   :  { %952 = vpow2.f32 %v623_v9 }
 0x3de   :  { %954 = vrcp.f32 %v404_v11 }
 0x3df   :  { %956 = vrcp.f32 %v407_v10 }
 0x3e0   :  { %v410_v26 = vpop.xlane.xlu1 %409 }
 0x3e1   :  { %958 = vrcp.f32 %v410_v26 }
 0x3e2   :  { %v949_v12 = vpop.eup %948 }
 0x3e3   :  { %v625_v13 = vsel %vm612_vm10, %v949_v12, 0.0  ;;  %v633_v14 = vpack.c.bf16 %v949_v12, %v949_v12  ;;  %v951_v15 = vpop.eup %950 }
 0x3e4   :  { %626 = vadd.xlane.f32.xlu0 %v625_v13  ;;  %v512_v20 = vmul.f32 %v951_v15, %v1205_v35 }
 0x3e5   :  { %906 = vmatmul.mubr.msk.bf16.vlgmr.msra.gmra.mxu1 %vm612_vm10, %v633_v14 }
 0x3e6   :  { %917 = vmatprep.mubr.msk.bf16.mxu1 %vm1059_vm0, %v1058_v58 }
 0x3ea   :  { %v953_v16 = vpop.eup %952 }
 0x3eb   :  { %v955_v27 = vpop.eup %954  ;;  %v628_v17 = vsel %vm612_vm10, %v953_v16, 0.0  ;;  %v634_v18 = vpack.c.bf16 %v953_v16, %v953_v16 }
 0x3ec   :  { %v957_v19 = vpop.eup %956  ;;  %629 = vadd.xlane.f32.xlu1 %v628_v17  ;;  %v513_v21 = vmul.f32 %v955_v27, %v1211_v38 }
 0x3ed   :  { %912 = vmatmul.mubr.msk.bf16.vlgmr.msra.gmra.mxu0 %vm612_vm10, %v634_v18  ;;  %v514_v28 = vmul.f32 %v957_v19, %v1214_v41 }
 0x3ee   :  { %v959_v22 = vpop.eup %958  ;;  %v721_v23 = vpack.c.bf16 %v513_v21, %v512_v20  ;;  %923 = vmatprep.mubr.msk.bf16.mxu0 %vm1059_vm0, %v1058_v58 }
 0x3ef   :  { %v515_v29 = vmul.f32 %v959_v22, %v508_v48 }
 0x3f0   :  { %916 = vmatpush3.bf16.msra.mxu1 %v721_v23 }
 0x3f1   :  { %v722_v6 = vpack.c.bf16 %v515_v29, %v514_v28 }
 0x3f3   :  { %918 = vmatmul.mubr.msk.bf16.vlgmr.msra.gmra.mxu1 %vm612_vm10, %v633_v14  ;;  %922 = vmatpush3.bf16.msra.mxu0 %v722_v6 }
 0x3f6   :  { %924 = vmatmul.mubr.msk.bf16.vlgmr.msra.gmra.mxu0 %vm612_vm10, %v634_v18 }
 0x46d   :  { %v627_v30 = vpop.xlane.xlu0 %626 }
 0x46e   :  { %960 = vrcp.f32 %v627_v30 }
 0x475   :  { %v630_v31 = vpop.xlane.xlu1 %629 }
 0x476   :  { %962 = vrcp.f32 %v630_v31 }
 0x47b   :  { %v961_v32 = vpop.eup %960 }
 0x483   :  { %v963_v54 = vpop.eup %962 }
 0x4a5   :  { %v672_v33 = vpop.f32.mrf.mxu1 }
 0x4a6   :  { %v805_v34 = vmul.f32 %v961_v32, %v672_v33 }
 0x4a7   :  { %v907_v24 = vpop.f32.mrf.mxu1 }
 0x4a8   :  { %807 = vst [vmem:[#allocation8 + $0x8] sm:$0xff] %v805_v34 }
 0x4a9   :  { %v675_v58 = vpop.f32.mrf.mxu1 }
 0x4ab   :  { %v908_v5 = vpop.f32.mrf.mxu1 }
 0x4ad   :  { %v715_v25 = vpop.f32.mrf.mxu0 }
 0x4ae   :  { %v806_v35 = vmul.f32 %v963_v54, %v715_v25 }
 0x4af   :  { %v913_v36 = vpop.f32.mrf.mxu0 }
 0x4b0   :  { %808 = vst [vmem:[#allocation8 + $0x20] sm:$0xff] %v806_v35 }
 0x4b1   :  { %v718_v37 = vpop.f32.mrf.mxu0 }
 0x4b3   :  { %v757_v57 = vpop.f32.mrf.mxu1  ;;  %v914_v38 = vpop.f32.mrf.mxu0 }
 0x4b4   :  { %v809_v39 = vmul.f32 %v961_v32, %v757_v57 }
 0x4b5   :  { %v919_v40 = vpop.f32.mrf.mxu1 }
 0x4b6   :  { %811 = vst [vmem:[#allocation8 + $0x10] sm:$0xff] %v809_v39  ;;  %v797_v41 = vpop.f32.mrf.mxu0 }
 0x4b7   :  { %v760_v42 = vpop.f32.mrf.mxu1  ;;  %v810_v43 = vmul.f32 %v963_v54, %v797_v41 }
 0x4b8   :  { %v925_v44 = vpop.f32.mrf.mxu0 }
 0x4b9   :  { %812 = vst [vmem:[#allocation8 + $0x28] sm:$0xff] %v810_v43  ;;  %v920_v45 = vpop.f32.mrf.mxu1 }
 0x4ba   :  { %v800_v46 = vpop.f32.mrf.mxu0 }
 0x4bb   :  { %1035 = shalt.err (!%p1032_p5)
}
 0x4bc   :  { %s1061_s23 = smov 384   ;;  %s1062_s24 = smov 24   ;;  %v926_v47 = vpop.f32.mrf.mxu0 }
 0x4bd   :  { %824 = dma.vmem_to_hbm [thread:$0]  %s819_s21, 768, %s1246_s6, [#allocation4], %s1061_s23, %s1061_s23, %s1062_s24  }
 0x4be   :  { %1048 = dma.done.wait [#allocation4], 768  }
 0x4bf   :  { %1049 = vsyncadd [#allocation4], 4294966528 }
 0x4c0   :  { %828 = vsyncpa [#allocation3], 1 }
 0x4c1   :  { %829 = vsyncpa [#allocation6], 1 }
 0x4c2   :  { %830 = vsyncpa [#allocation4], 1 }

</bundles_post_ra>
